<compile_context>
chip_gen: v5e
topology: v5e:2x2
jax: 0.10.0
libtpu: 0.0.40
codegen_flags: <defaults>
</compile_context>

<pallas_src>
import jax
import jax.numpy as jnp
from jax.experimental import pallas as pl
from jax.experimental.pallas import tpu as pltpu


def time_embed_kernel(t_ref, vec_ref, w1_ref, w2_ref, o_ref):
    # Shapes derived from the weight refs (vec_ref may be lane-padded).
    C = w1_ref.shape[1]           # channels
    D = w2_ref.shape[1]           # output dim

    vec = vec_ref[...]            # (4, P) packed rows: coeff, phase, b1, b2
    coeff = vec[0:1, :C]          # (1, C)
    phase = vec[1:2, :C]          # (1, C)
    b1 = vec[2:3, :C]             # (1, C)
    b2 = vec[3:4, :D]             # (1, D)

    t = t_ref[...]                                   # (Bt, 1)
    arg = coeff * t + phase                          # (Bt, C)
    # Lane-concat (C + C = 2C <= 128 lanes) -> single MXU push for W1.
    emb = jnp.concatenate([jnp.sin(arg), jnp.cos(arg)], axis=-1)   # (Bt, 2C)

    h = jnp.dot(emb, w1_ref[...], preferred_element_type=jnp.float32) + b1
    h = jnp.maximum(h, 0.0)       # ReLU activation
    out = jnp.dot(h, w2_ref[...], preferred_element_type=jnp.float32) + b2
    o_ref[...] = out.astype(o_ref.dtype)


def _pack_small_params(coeff, phase, b1, b2):
    """Pack the four tiny row vectors into one (4, max(C, D)) f32 array."""
    C = coeff.shape[1]
    D = b2.shape[1]
    P = max(C, D)
    pad = lambda v: jnp.pad(v.astype(jnp.float32), ((0, 0), (0, P - v.shape[1])))
    return jnp.concatenate([pad(coeff), pad(phase), pad(b1), pad(b2)], axis=0)


def time_embed_forward(t, coeff, phase, w1, b1, w2, b2, *, block_b=512):
    """Fused TimeEmbed forward. t may be 0-d, 1-d, or (B, 1)."""
    t = jnp.asarray(t, jnp.float32).reshape(-1, 1)   # t.view(-1, 1).float()
    B = t.shape[0]
    D = w2.shape[1]
    packed = _pack_small_params(coeff, phase, b1, b2)
    vmem = pltpu.MemorySpace.VMEM

    if B <= block_b:
        # Grid-less single shot: no pipeline scaffolding, whole arrays in VMEM.
        return pl.pallas_call(
            time_embed_kernel,
            out_shape=jax.ShapeDtypeStruct((B, D), jnp.float32),
            in_specs=[
                pl.BlockSpec(memory_space=vmem),     # t
                pl.BlockSpec(memory_space=vmem),     # packed (coeff/phase/b1/b2)
                pl.BlockSpec(memory_space=vmem),     # W1
                pl.BlockSpec(memory_space=vmem),     # W2
            ],
            out_specs=pl.BlockSpec(memory_space=vmem),
        )(t, packed, w1, w2)

    # Large-batch path: tile over B; weights/params stay VMEM-resident across
    # grid steps (constant index maps); batch axis is "parallel" so it can be
    # sharded across TensorCores on megacore parts (v7x).
    nb = pl.cdiv(B, block_b)
    Bp = nb * block_b
    if Bp != B:
        t = jnp.pad(t, ((0, Bp - B), (0, 0)))
    out = pl.pallas_call(
        time_embed_kernel,
        out_shape=jax.ShapeDtypeStruct((Bp, D), jnp.float32),
        grid=(nb,),
        in_specs=[
            pl.BlockSpec((block_b, 1), lambda i: (i, 0)),
            pl.BlockSpec(packed.shape, lambda i: (0, 0)),
            pl.BlockSpec(w1.shape, lambda i: (0, 0)),
            pl.BlockSpec(w2.shape, lambda i: (0, 0)),
        ],
        out_specs=pl.BlockSpec((block_b, D), lambda i: (i, 0)),
        compiler_params=pltpu.CompilerParams(
            dimension_semantics=("parallel",)),
    )(t, packed, w1, w2)
    return out[:B] if Bp != B else out


def make_params(key, dim, channels):
    """Deterministic parameter init mirroring the module's __init__ shapes."""
    k_phase, k_w1, k_b1, k_w2, k_b2 = jax.random.split(key, 5)
    C = channels
    coeff = jnp.linspace(0.1, 100.0, C, dtype=jnp.float32).reshape(1, C)
    phase = jax.random.normal(k_phase, (1, C), jnp.float32)
    lim1 = 1.0 / jnp.sqrt(2.0 * C)
    w1 = jax.random.uniform(k_w1, (2 * C, C), jnp.float32, -lim1, lim1)
    b1 = jax.random.uniform(k_b1, (1, C), jnp.float32, -lim1, lim1)
    lim2 = 1.0 / jnp.sqrt(float(C))
    w2 = jax.random.uniform(k_w2, (C, dim), jnp.float32, -lim2, lim2)
    b2 = jax.random.uniform(k_b2, (1, dim), jnp.float32, -lim2, lim2)
    return coeff, phase, w1, b1, w2, b2


def reference_forward(t, coeff, phase, w1, b1, w2, b2):
    """Pure-JAX reference matching the PyTorch forward semantics."""
    t = jnp.asarray(t, jnp.float32).reshape(-1, 1)
    arg = coeff * t + phase
    emb = jnp.concatenate([jnp.sin(arg), jnp.cos(arg)], axis=1)
    h = jnp.maximum(emb @ w1 + b1, 0.0)
    return h @ w2 + b2


if __name__ == "__main__":
    key = jax.random.PRNGKey(0)
    k_params, k_t1, k_t2 = jax.random.split(key, 3)

    dim = 4        # model output dimension (dim_out)
    channels = 32  # embedding channels
    params = make_params(k_params, dim, channels)

    # Small batch -> grid-less single-shot path.
    t_small = jax.random.uniform(k_t1, (8,), jnp.float32)
    out_small = jax.block_until_ready(time_embed_forward(t_small, *params))
    ref_small = reference_forward(t_small, *params)
    assert out_small.shape == (8, dim)
    assert jnp.allclose(out_small, ref_small, atol=1e-4, rtol=1e-4), "small-batch mismatch"

    # Non-divisible larger batch with a tiny block to exercise the tiled
    # (grid-over-B) path plus the pad/slice handling.
    t_big = jax.random.uniform(k_t2, (19,), jnp.float32)
    out_big = jax.block_until_ready(
        time_embed_forward(t_big, *params, block_b=8))
    ref_big = reference_forward(t_big, *params)
    assert out_big.shape == (19, dim)
    assert jnp.allclose(out_big, ref_big, atol=1e-4, rtol=1e-4), "tiled-batch mismatch"

    print("KERNEL_OK")
</pallas_src>

<mosaic_0001>
module attributes {stable_mosaic.version = 11 : i64} {
  func.func @time_embed_kernel(%arg0: memref<8x1xf32, #tpu.memory_space<vmem>>, %arg1: memref<4x32xf32, #tpu.memory_space<vmem>>, %arg2: memref<64x32xf32, #tpu.memory_space<vmem>>, %arg3: memref<32x4xf32, #tpu.memory_space<vmem>>, %arg4: memref<8x4xf32, #tpu.memory_space<vmem>>) attributes {dimension_semantics = [], scalar_prefetch = 0 : i64, scratch_operands = 0 : i64, tpu.core_type = #tpu.core_type<tc>} {
    %c0 = arith.constant 0 : index
    %c0_0 = arith.constant 0 : index
    %0 = vector.load %arg1[%c0, %c0_0] : memref<4x32xf32, #tpu.memory_space<vmem>>, vector<4x32xf32>
    %1 = vector.extract_strided_slice %0 {offsets = [0, 0], sizes = [1, 32], strides = [1, 1]} : vector<4x32xf32> to vector<1x32xf32>
    %2 = vector.extract_strided_slice %0 {offsets = [1, 0], sizes = [1, 32], strides = [1, 1]} : vector<4x32xf32> to vector<1x32xf32>
    %3 = vector.extract_strided_slice %0 {offsets = [2, 0], sizes = [1, 32], strides = [1, 1]} : vector<4x32xf32> to vector<1x32xf32>
    %4 = vector.extract_strided_slice %0 {offsets = [3, 0], sizes = [1, 4], strides = [1, 1]} : vector<4x32xf32> to vector<1x4xf32>
    %c0_1 = arith.constant 0 : index
    %c0_2 = arith.constant 0 : index
    %5 = vector.load %arg0[%c0_1, %c0_2] : memref<8x1xf32, #tpu.memory_space<vmem>>, vector<8x1xf32>
    %6 = vector.broadcast %1 : vector<1x32xf32> to vector<8x32xf32>
    %7 = vector.broadcast %5 : vector<8x1xf32> to vector<8x32xf32>
    %8 = arith.mulf %6, %7 : vector<8x32xf32>
    %9 = vector.broadcast %2 : vector<1x32xf32> to vector<8x32xf32>
    %10 = arith.addf %8, %9 : vector<8x32xf32>
    %11 = math.sin %10 : vector<8x32xf32>
    %12 = math.cos %10 : vector<8x32xf32>
    %13 = tpu.concatenate %11, %12 in 1 : vector<8x32xf32>, vector<8x32xf32> -> vector<8x64xf32>
    %c0_3 = arith.constant 0 : index
    %c0_4 = arith.constant 0 : index
    %14 = vector.load %arg2[%c0_3, %c0_4] : memref<64x32xf32, #tpu.memory_space<vmem>>, vector<64x32xf32>
    %cst = arith.constant dense<0.000000e+00> : vector<8x32xf32>
    %15 = tpu.matmul %13, %14, %cst {dimension_numbers = #tpu.dot_dimension_numbers<[1], [0], [0], [1], [0, 0, 1, 1], [], []>} : vector<8x64xf32>, vector<64x32xf32>, vector<8x32xf32> -> vector<8x32xf32>
    %16 = vector.broadcast %3 : vector<1x32xf32> to vector<8x32xf32>
    %17 = arith.addf %15, %16 : vector<8x32xf32>
    %cst_5 = arith.constant 0.000000e+00 : f32
    %18 = vector.broadcast %cst_5 : f32 to vector<8x32xf32>
    %19 = arith.maximumf %17, %18 : vector<8x32xf32>
    %c0_6 = arith.constant 0 : index
    %c0_7 = arith.constant 0 : index
    %20 = vector.load %arg3[%c0_6, %c0_7] : memref<32x4xf32, #tpu.memory_space<vmem>>, vector<32x4xf32>
    %cst_8 = arith.constant dense<0.000000e+00> : vector<8x4xf32>
    %21 = tpu.matmul %19, %20, %cst_8 {dimension_numbers = #tpu.dot_dimension_numbers<[1], [0], [0], [1], [0, 0, 1, 1], [], []>} : vector<8x32xf32>, vector<32x4xf32>, vector<8x4xf32> -> vector<8x4xf32>
    %22 = vector.broadcast %4 : vector<1x4xf32> to vector<8x4xf32>
    %23 = arith.addf %21, %22 : vector<8x4xf32>
    %c0_9 = arith.constant 0 : index
    %c0_10 = arith.constant 0 : index
    %24 = vector.load %arg4[%c0_9, %c0_10] : memref<8x4xf32, #tpu.memory_space<vmem>>, vector<8x4xf32>
    tpu.vector_store %arg4[%c0_9, %c0_10], %23 {strides = array<i32>} : memref<8x4xf32, #tpu.memory_space<vmem>>, vector<8x4xf32>,
    return
  }
}

</mosaic_0001>

<bundles_post_ra>
// kernel: tpu_custom_call.1
= control target key start
LH: loop header
LB: loop body
LE: loop exit
PB: predicated region body
PF: predicated region fallthrough
CT: control target
= control target key end

     0   :  { %v428_v0 = vmov 0   ;;  %v429_v19 = vmov 2102212464   ;;  %v430_v21 = vmov 920167782   ;;  %s435_s5 = smov 32   ;;  %s571_s0 = inlined_call_operand.vmem [shape: f32[8,1], index: 0, kind: input, shape index: {}]   ;;  %s572_s1 = inlined_call_operand.vmem [shape: f32[4,32], index: 1, kind: input, shape index: {}]   ;;  %s573_s2 = inlined_call_operand.vmem [shape: f32[64,32], index: 2, kind: input, shape index: {}]   ;;  %s574_s3 = inlined_call_operand.vmem [shape: f32[32,4], index: 3, kind: input, shape index: {}]   ;;  %s575_s4 = inlined_call_operand.vmem [shape: f32[8,4], index: 4, kind: output, shape index: {}]  }
   0x1   :  { %427 = vset.pattern.permute.xlu0 %v428_v0  ;;  %v18_v1 = vld [vmem:[%s571_s0] sm:$0xff]  ;;  %v431_v24 = vmov 1326507024   ;;  %v432_v26 = vmov 683565275  }
   0x2   :  { %22 = vperm.xlu0 %427, %v18_v1   ;;  %v468_v2 = vld [vmem:[%s572_s1] sm:$0xf]  ;;  %v433_v28 = vmov 2475754826   ;;  %v434_v31 = vmov 2131351028  }
   0x3   :  { %v19_v3 = vperm.slane %v468_v2, 0  ;;  %v26_v4 = vperm.slane %v468_v2, 1 }
  0x74   :  { %v23_v5 = vpop.permute.xlu0 %22 }
  0x75   :  { %v25_v6 = vmul.f32 %v23_v5, %v19_v3 }
  0x77   :  { %v472_v7 = vadd.f32 %v26_v4, %v25_v6 }
  0x79   :  { %v31_v8 = vand.u32 2139095040, %v472_v7  ;;  %v28_v11 = vand.u32 2147483647, %v472_v7  ;;  %vm30_vm12 = vcmp.lt.s32.totalorder %v472_v7, 0 }
  0x7b   :  { %v32_v9 = vshrl.u32 %v31_v8, 23  ;;  %v35_v13 = vand.u32 8388607, %v28_v11  ;;  %vm29_vm13 = vcmp.le.f32.partialorder %v28_v11, 0.7853982 }
  0x7d   :  { %v411_v10 = vadd.s32 4294967169, %v32_v9  ;;  %v36_v17 = vor.u32 8388608, %v35_v13 }
  0x7f   :  { %v38_v12 = vadd.s32 1, %v411_v10  ;;  %v487_v38 = vshll.u32 %v36_v17, 8 }
  0x81   :  { %vm39_vm0 = vcmp.gt.s32.totalorder %v38_v12, 0  ;;  %v77_v48 = vand.u32 65535, %v487_v38  ;;  %v78_v50 = vshrl.u32 %v487_v38, 16 }
  0x82   :  { %v40_v14 = vsel %vm39_vm0, %v38_v12, 0 }
  0x83   :  { %v42_v15 = vand.u32 31, %v40_v14  ;;  %v480_v18 = vshrl.u32 %v40_v14, 5 }
  0x85   :  { %v478_v16 = vsub.s32 32, %v42_v15  ;;  %v54_v20 = vshll.u32 %v429_v19, %v42_v15  ;;  %v57_v22 = vshll.u32 %v430_v21, %v42_v15  ;;  %v45_v27 = vshll.u32 %v432_v26, %v42_v15 }
  0x86   :  { %v48_v30 = vshll.u32 %v433_v28, %v42_v15  ;;  %v51_v33 = vshll.u32 %v434_v31, %v42_v15  ;;  %vm63_vm1 = vcmp.lt.s32.totalorder %v480_v18, 4  ;;  %vm60_vm2 = vcmp.lt.s32.totalorder %v480_v18, 1 }
  0x87   :  { %v55_v23 = vshrl.u32 %v430_v21, %v478_v16  ;;  %v58_v25 = vshrl.u32 %v431_v24, %v478_v16  ;;  %v46_v29 = vshrl.u32 %v433_v28, %v478_v16  ;;  %v49_v32 = vshrl.u32 %v434_v31, %v478_v16 }
  0x88   :  { %v52_v34 = vshrl.u32 %v429_v19, %v478_v16  ;;  %vm62_vm3 = vcmp.lt.s32.totalorder %v480_v18, 3  ;;  %vm61_vm4 = vcmp.lt.s32.totalorder %v480_v18, 2  ;;  %v44_v13 = vshrl.u32 %v432_v26, %v478_v16 }
  0x89   :  { %v56_v35 = vor.u32 %v55_v23, %v54_v20  ;;  %v59_v36 = vor.u32 %v58_v25, %v57_v22  ;;  %v47_v37 = vor.u32 %v46_v29, %v45_v27  ;;  %v50_v39 = vor.u32 %v49_v32, %v48_v30 }
  0x8a   :  { %v53_v40 = vor.u32 %v52_v34, %v51_v33 }
  0x8b   :  { %v69_v41 = vsel %vm63_vm1, %v56_v35, 920167782  ;;  %v73_v42 = vsel %vm63_vm1, %v59_v36, 1326507024  ;;  %v68_v43 = vsel %vm60_vm2, %v47_v37, %v50_v39  ;;  %v64_v21 = vsel %vm60_vm2, %v44_v13, %v47_v37 }
  0x8c   :  { %v70_v44 = vsel %vm62_vm3, %v53_v40, %v69_v41  ;;  %v72_v45 = vsel %vm60_vm2, %v50_v39, %v53_v40  ;;  %v74_v47 = vsel %vm62_vm3, %v56_v35, %v73_v42  ;;  %v65_v9 = vsel %vm63_vm1, %v53_v40, 2102212464 }
  0x8d   :  { %v71_v46 = vsel %vm61_vm4, %v68_v43, %v70_v44  ;;  %v75_v49 = vsel %vm61_vm4, %v72_v45, %v74_v47  ;;  %v66_v22 = vsel %vm62_vm3, %v50_v39, %v65_v9 }
  0x8e   :  { %v101_v51 = vand.u32 65535, %v71_v46  ;;  %v102_v52 = vshrl.u32 %v71_v46, 16  ;;  %v79_v53 = vand.u32 65535, %v75_v49  ;;  %v80_v54 = vshrl.u32 %v75_v49, 16 }
  0x8f   :  { %v67_v26 = vsel %vm61_vm4, %v64_v21, %v66_v22  ;;  %vm171_vm4 = vweird.f32 %v472_v7 }
  0x90   :  { %v104_v55 = vmul.u32 %v102_v52, %v77_v48  ;;  %v105_v56 = vmul.u32 %v101_v51, %v78_v50  ;;  %v82_v57 = vmul.u32 %v80_v54, %v77_v48  ;;  %v83_v58 = vmul.u32 %v79_v53, %v78_v50 }
  0x91   :  { %v103_v59 = vmul.u32 %v101_v51, %v77_v48  ;;  %v81_v61 = vmul.u32 %v79_v53, %v77_v48  ;;  %v106_v63 = vmul.u32 %v102_v52, %v78_v50  ;;  %v84_v1 = vmul.u32 %v80_v54, %v78_v50  ;;  %v350_v51 = vld [vmem:[%s573_s2 + $0x38] sm:$0xff]  ;;  %v349_v52 = vld [vmem:[%s573_s2 + $0x30] sm:$0xff]  ;;  %v348_v54 = vld [vmem:[%s573_s2 + $0x28] sm:$0xff] }
  0x92   :  { %v107_v60 = vshll.u32 %v104_v55, 16  ;;  %v85_v62 = vshll.u32 %v82_v57, 16  ;;  %v109_v3 = vshll.u32 %v105_v56, 16  ;;  %v87_v5 = vshll.u32 %v83_v58, 16  ;;  %364 = vmatpush.msra.mxu0 %v350_v51 }
  0x93   :  { %v108_v19 = vshrl.u32 %v104_v55, 16  ;;  %v86_v23 = vshrl.u32 %v82_v57, 16  ;;  %v110_v25 = vshrl.u32 %v105_v56, 16  ;;  %v88_v28 = vshrl.u32 %v83_v58, 16  ;;  %v347_v57 = vld [vmem:[%s573_s2 + $0x20] sm:$0xff] }
  0x94   :  { %vm111_vm5 = vc.u32 %v103_v59, %v107_v60  ;;  %v113_v4 = vadd.s32 %v107_v60, %v103_v59  ;;  %vm89_vm6 = vc.u32 %v81_v61, %v85_v62  ;;  %v91_v6 = vadd.s32 %v85_v62, %v81_v61  ;;  %365 = vmatpush.msra.mxu0 %v349_v52  ;;  %v346_v59 = vld [vmem:[%s573_s2 + $0x18] sm:$0xff]  ;;  %v345_v62 = vld [vmem:[%s573_s2 + $0x10] sm:$0xff] }
  0x95   :  { %v112_v8 = vsel %vm111_vm5, 1, %v428_v0  ;;  %v90_v10 = vsel %vm89_vm6, 1, %v428_v0  ;;  %v121_v32 = vmul.u32 %v487_v38, %v67_v26  ;;  %vm341_vm5 = vcmask 261120  }
  0x96   :  { %v114_v12 = vadd.s32 %v112_v8, %v106_v63  ;;  %vm115_vm7 = vc.u32 %v113_v4, %v109_v3  ;;  %v92_v14 = vadd.s32 %v90_v10, %v84_v1  ;;  %vm93_vm8 = vc.u32 %v91_v6, %v87_v5  ;;  %366 = vmatpush.msra.mxu0 %v348_v54 }
  0x97   :  { %v116_v15 = vsel %vm115_vm7, 1, %v428_v0  ;;  %v94_v17 = vsel %vm93_vm8, 1, %v428_v0  ;;  %v117_v0 = vadd.s32 %v113_v4, %v109_v3  ;;  %v344_v3 = vld [vmem:[%s573_s2 + $0x8] sm:$0xff]  ;;  %vm352_vm6 = vcmask 523264  }
  0x98   :  { %v118_v20 = vadd.s32 %v116_v15, %v114_v12  ;;  %v96_v24 = vadd.s32 %v94_v17, %v92_v14  ;;  %367 = vmatpush.msra.mxu0 %v347_v57  ;;  %vm405_vm7 = vcmask 31744  }
  0x9a   :  { %v119_v27 = vadd.s32 %v118_v20, %v108_v19  ;;  %v97_v16 = vadd.s32 %v96_v24, %v86_v23  ;;  %368 = vmatpush.msra.mxu0 %v346_v59 }
  0x9c   :  { %v120_v29 = vadd.s32 %v119_v27, %v110_v25  ;;  %v98_v30 = vadd.s32 %v97_v16, %v88_v28  ;;  %369 = vmatpush.msra.mxu0 %v345_v62 }
  0x9e   :  { %v124_v31 = vadd.s32 1, %v120_v29  ;;  %vm123_vm9 = vc.u32 %v98_v30, %v117_v0  ;;  %v122_v44 = vadd.s32 %v117_v0, %v98_v30  ;;  %370 = vmatpush.msra.mxu0 %v344_v3 }
  0xa0   :  { %v125_v33 = vsel %vm123_vm9, %v124_v31, %v120_v29 }
  0xa1   :  { %v126_v34 = vadd.s32 %v125_v33, %v121_v32 }
  0xa3   :  { %v127_v35 = vadd.s32 536870912, %v126_v34 }
  0xa5   :  { %v128_v36 = vshrl.u32 %v127_v35, 30  ;;  %v380_v35 = vld [vmem:[%s574_s3 + $0x18] sm:$0xff] }
  0xa6   :  { %397 = vmatpush.msra.mxu1 %v380_v35 }
  0xa7   :  { %v129_v37 = vshll.u32 %v128_v36, 30  ;;  %v152_v61 = vsub.s32 4, %v128_v36 }
  0xa9   :  { %v130_v39 = vsub.s32 %v126_v34, %v129_v37  ;;  %v153_v5 = vsel %vm30_vm12, %v152_v61, %v128_v36  ;;  %v343_v34 = vld [vmem:[%s573_s2] sm:$0xff]  ;;  %v379_v37 = vld [vmem:[%s574_s3 + $0x10] sm:$0xff] }
  0xaa   :  { %v155_v9 = vsel %vm29_vm13, 0, %v153_v5  ;;  %371 = vmatpush.msra.mxu0 %v343_v34  ;;  %398 = vmatpush.msra.mxu1 %v379_v37 }
  0xab   :  { %vm131_vm10 = vcmp.lt.s32.totalorder %v130_v39, 0  ;;  %v132_v40 = vsub.s32 0, %v130_v39  ;;  %v172_v11 = vadd.s32 3, %v155_v9  ;;  %v327_v24 = vand.u32 3, %v155_v9 }
  0xad   :  { %v133_v41 = vsel %vm131_vm10, %v132_v40, %v130_v39  ;;  %v173_v21 = vand.u32 3, %v172_v11  ;;  %vm328_vm0 = vcmp.lt.s32.totalorder %v327_v24, 2  ;;  %vm329_vm1 = vcmp.eq.s32.totalorder %v327_v24, 0  ;;  %v377_v40 = vld [vmem:[%s574_s3] sm:$0xff] }
  0xae   :  { %v134_v42 = vclz %v133_v41  ;;  %vm332_vm2 = vcmp.eq.s32.totalorder %v327_v24, 2  ;;  %v351_v41 = vperm.slane %v468_v2, 2 }
  0xaf   :  { %vm178_vm14 = vcmp.eq.s32.totalorder %v173_v21, 2  ;;  %vm175_vm15 = vcmp.eq.s32.totalorder %v173_v21, 0  ;;  %vm174_vm3 = vcmp.lt.s32.totalorder %v173_v21, 2 }
  0xb0   :  { %v412_v43 = vadd.s32 4294967294, %v134_v42 }
  0xb2   :  { %vm413_vm11 = vcmp.lt.s32.totalorder %v412_v43, 0 }
  0xb3   :  { %v137_v18 = vsel %vm413_vm11, 0, %v412_v43 }
  0xb4   :  { %v138_v45 = vsub.s32 32, %v137_v18  ;;  %v142_v46 = vsub.s32 4294967266, %v137_v18  ;;  %v139_v47 = vshll.u32 %v130_v39, %v137_v18  ;;  %v378_v39 = vld [vmem:[%s574_s3 + $0x8] sm:$0xff] }
  0xb5   :  { %399 = vmatpush.msra.mxu1 %v378_v39 }
  0xb6   :  { %v140_v48 = vshrl.u32 %v122_v44, %v138_v45  ;;  %v143_v38 = vadd.s32 127, %v142_v46  ;;  %v381_v44 = vperm.slane %v468_v2, 3 }
  0xb7   :  { %400 = vmatpush.msra.mxu1 %v377_v40 }
  0xb8   :  { %v141_v49 = vor.u32 %v140_v48, %v139_v47  ;;  %v144_v50 = vshll.u32 %v143_v38, 23 }
  0xba   :  { %v145_v53 = vor.u32 4788187, %v144_v50  ;;  %v148_v56 = vcvt.s32.f32 %v141_v49 }
  0xbc   :  { %v146_v55 = vand.u32 2147483647, %v145_v53 }
  0xbe   :  { %v149_v58 = vmul.f32 %v148_v56, %v146_v55 }
  0xc0   :  { %v150_v60 = vxor.u32 2147483648, %v149_v58 }
  0xc2   :  { %v151_v63 = vsel %vm30_vm12, %v150_v60, %v149_v58 }
  0xc3   :  { %v154_v1 = vsel %vm29_vm13, %v472_v7, %v151_v63 }
  0xc4   :  { %v156_v4 = vmul.f32 %v154_v1, %v154_v1 }
  0xc6   :  { %v157_v6 = vmul.f32 -0.001358992, %v156_v4  ;;  %v164_v8 = vmul.f32 -0.00019511016, %v156_v4 }
  0xc8   :  { %v158_v10 = vadd.f32 0.041655596, %v157_v6  ;;  %v165_v12 = vadd.f32 0.008332121, %v164_v8 }
  0xca   :  { %v159_v13 = vmul.f32 %v158_v10, %v156_v4  ;;  %v166_v14 = vmul.f32 %v165_v12, %v156_v4 }
  0xcc   :  { %v160_v15 = vadd.f32 -0.4999988, %v159_v13  ;;  %v167_v17 = vadd.f32 -0.16666654, %v166_v14 }
  0xce   :  { %v161_v19 = vmul.f32 %v160_v15, %v156_v4  ;;  %v168_v20 = vmul.f32 %v167_v17, %v156_v4 }
  0xd0   :  { %v162_v22 = vadd.f32 1.0, %v161_v19  ;;  %v169_v23 = vadd.f32 1.0, %v168_v20 }
  0xd2   :  { %v170_v25 = vmul.f32 %v169_v23, %v154_v1  ;;  %v179_v27 = vxor.u32 2147483648, %v162_v22 }
  0xd4   :  { %v176_v28 = vxor.u32 2147483648, %v170_v25  ;;  %v180_v16 = vsel %vm178_vm14, %v179_v27, %v170_v25  ;;  %v334_v29 = vsel %vm332_vm2, %v179_v27, %v170_v25 }
  0xd6   :  { %v331_v26 = vsel %vm329_vm1, %v162_v22, %v176_v28  ;;  %v177_v30 = vsel %vm175_vm15, %v162_v22, %v176_v28 }
  0xd7   :  { %v335_v0 = vsel %vm328_vm0, %v331_v26, %v334_v29  ;;  %v181_v31 = vsel %vm174_vm3, %v177_v30, %v180_v16 }
  0xd8   :  { %v336_v32 = vsel %vm171_vm4, nan, %v335_v0  ;;  %v182_v33 = vsel %vm171_vm4, nan, %v181_v31 }
  0xd9   :  { %338 = vrot.lane.b32.xlu0 %v336_v32, %s435_s5 }
 0x14b   :  { %v339_v36 = vpop.permute.xlu0 %338 }
 0x14c   :  { %v342_v7 = vsel %vm341_vm5, %v182_v33, %v339_v36 }
 0x14d   :  { %417 = vmatmul.msk.f32.vlgmr.msra.gmra.mxu0 %vm352_vm6, %v342_v7 }
 0x1ca   :  { %v373_v42 = vpop.f32.mrf.mxu0 }
 0x1cb   :  { %v374_v43 = vadd.f32 %v373_v42, %v351_v41 }
 0x1cd   :  { %v376_v18 = vmax.f32 %v374_v43, 0.0 }
 0x1cf   :  { %418 = vmatmul.msk.f32.vlgmr.msra.gmra.mxu1 %vm341_vm5, %v376_v18 }
 0x24c   :  { %v402_v45 = vpop.f32.mrf.mxu1 }
 0x24d   :  { %v403_v46 = vadd.f32 %v402_v45, %v381_v44 }
 0x24f   :  { %406 = vst.msk [vmem:[%s575_s4] sm:$0xff] %vm405_vm7, %v403_v46 }

</bundles_post_ra>
